<compile_context>
chip_gen: v5e
topology: v5e:2x2
jax: 0.10.0
libtpu: 0.0.40
codegen_flags: <defaults>
</compile_context>

<pallas_src>
import functools
import math

import jax
import jax.numpy as jnp
import numpy as np
from jax.experimental import pallas as pl
from jax.experimental.pallas import tpu as pltpu


# ------------------------------ fused kernel ------------------------------- #

def _fused_kernel(x_ref, w_ref, wlin_ref, blin_ref, out_ref, qkv_ref, *,
                  num_heads, hidden_dim, bt, seq_len):
    """One grid step == one block of `bt` batch elements.

    x_ref    : (bt*seq_len, Fp)   packed input slab (features + per-group 1 cols)
    w_ref    : (Fp, 3*H*Hd)       fused QKV weight (bias rows appended), head-major
    wlin_ref : (H*Hd, Hd)         output linear weight (transposed from PyTorch)
    blin_ref : (1, Hd)            output linear bias
    out_ref  : (bt, seq_len, Hd)
    qkv_ref  : VMEM scratch (bt, seq_len, 3*H*Hd)
    """
    Hd = hidden_dim
    H = num_heads
    S = seq_len

    # --- single fused QKV projection (all heads / roles / groups), M = bt*S ----
    proj = jnp.dot(x_ref[...], w_ref[...], preferred_element_type=jnp.float32)
    qkv_ref[...] = proj.reshape(bt, S, 3 * H * Hd)

    # --- per-head attention + fused head-concat / output linear ----------------
    for h in range(H):
        win = qkv_ref[:, :, h * 3 * Hd:(h + 1) * 3 * Hd]        # contiguous window
        q = win[..., :Hd]                                        # (bt, S, Hd)
        k = win[..., Hd:2 * Hd]
        v = win[..., 2 * Hd:]

        s = jnp.einsum("bqd,bkd->bqk", q, k,
                       preferred_element_type=jnp.float32)       # Q K^T / scale
        s = s - jnp.max(s, axis=-1, keepdims=True)               # stable softmax
        p = jnp.exp(s)
        p = p * pl.reciprocal(jnp.sum(p, axis=-1, keepdims=True), approx=True)
        head_out = jnp.einsum("bqk,bkd->bqd", p, v,
                              preferred_element_type=jnp.float32)  # (bt, S, Hd)

        # head-concat + final linear fused, M = bt*S rows.
        contrib = jnp.dot(head_out.reshape(bt * S, Hd),
                          wlin_ref[h * Hd:(h + 1) * Hd, :],
                          preferred_element_type=jnp.float32)      # (bt*S, Hd)
        if h == 0:
            contrib = contrib + blin_ref[...]
            out_ref[...] = contrib.reshape(bt, S, Hd)
        else:
            out_ref[...] = out_ref[...] + contrib.reshape(bt, S, Hd)


# ----------------------------- parameters ---------------------------------- #

def _make_linear(key, out_dim, in_dim):
    # Deterministic init mimicking torch.nn.Linear default: U(-1/sqrt(fan_in), +...)
    k1, k2 = jax.random.split(key)
    bound = 1.0 / np.sqrt(in_dim)
    w = jax.random.uniform(k1, (out_dim, in_dim), jnp.float32, -bound, bound)
    b = jax.random.uniform(k2, (out_dim,), jnp.float32, -bound, bound)
    return w, b


def init_params(key, factories_input_dim, units_input_dim, hidden_dim, num_heads):
    """Raw parameters in the PyTorch layout (used by the pure-JAX reference)."""
    n = 6 * num_heads
    keys = jax.random.split(key, 2 * n + 1)
    fw, fb = zip(*[_make_linear(keys[i], hidden_dim, factories_input_dim) for i in range(n)])
    uw, ub = zip(*[_make_linear(keys[n + i], hidden_dim, units_input_dim) for i in range(n)])
    lw, lb = _make_linear(keys[-1], hidden_dim, hidden_dim * num_heads)
    return {"fac_w": jnp.stack(fw), "fac_b": jnp.stack(fb),        # (6H, Hd, Df), (6H, Hd)
            "unit_w": jnp.stack(uw), "unit_b": jnp.stack(ub),      # (6H, Hd, Du), (6H, Hd)
            "lin_w": lw, "lin_b": lb}                              # (Hd, Hd*H), (Hd,)


def pack_params(raw, hidden_dim, num_heads):
    """Init-time re-layout for the fused kernel:
       * per (player, input-kind): one (Din, 3*H*Hd) matrix (transposed from PyTorch),
         columns packed HEAD-MAJOR ([h: Q|K|V] per head), with 1/sqrt(hidden_dim)
         folded into the Q columns (weights AND biases);
       * final linear transposed to (H*Hd, Hd), bias reshaped to (1, Hd)."""
    scale = float(hidden_dim) ** 0.5

    def pack(w_stack, b_stack, player):
        w_cols, b_cols = [], []
        for h in range(num_heads):
            for role in range(3):                   # 0=Q, 1=K, 2=V (head-major)
                inv = (1.0 / scale) if role == 0 else 1.0
                idx = h * 6 + player * 3 + role
                w_cols.append(w_stack[idx].T * inv)   # (Din, Hd)
                b_cols.append(b_stack[idx] * inv)     # (Hd,)
        return (jnp.concatenate(w_cols, axis=1),      # (Din, 3*H*Hd)
                jnp.concatenate(b_cols)[None, :])     # (1, 3*H*Hd)

    fac = [pack(raw["fac_w"], raw["fac_b"], i) for i in range(2)]
    unit = [pack(raw["unit_w"], raw["unit_b"], i) for i in range(2)]
    return {
        "fac_w": tuple(p[0] for p in fac), "fac_b": tuple(p[1] for p in fac),
        "unit_w": tuple(p[0] for p in unit), "unit_b": tuple(p[1] for p in unit),
        "lin_w": jnp.asarray(raw["lin_w"].T),         # (H*Hd, Hd)
        "lin_b": raw["lin_b"][None, :],               # (1, Hd)
    }


# ----------------------------- forward (single pallas_call) ----------------- #

def four_seq_mh_attention(packed, state, hidden_dim, num_heads, *, target_rows=256):
    Hd, H = hidden_dim, num_heads

    lengths = {"player_0": {}, "player_1": {}}
    xs, ws, bs = [], [], []
    for i, player in enumerate(("player_0", "player_1")):
        fac = state[player]["factories"]
        lengths[player]["factories"] = fac.shape[1]
        xs.append(fac); ws.append(packed["fac_w"][i]); bs.append(packed["fac_b"][i])
        units = state[player]["units"]
        if units is not None and len(units) > 0:
            lengths[player]["units"] = units.shape[1]
            xs.append(units); ws.append(packed["unit_w"][i]); bs.append(packed["unit_b"][i])
        else:
            lengths[player]["units"] = 0

    B = int(xs[0].shape[0])
    G = len(xs)
    feat_dims = [int(x.shape[-1]) for x in xs]
    F_total = sum(feat_dims)
    Fp = F_total + G                                  # + one 1.0 (bias) column per group
    S = sum(int(x.shape[1]) for x in xs)
    qkv_w = 3 * H * Hd

    # --- pack the G inputs into one zero-padded (B, S, Fp) slab ----------------
    slabs, col = [], 0
    for g, x in enumerate(xs):
        n, d = int(x.shape[1]), int(x.shape[2])
        left = jnp.zeros((B, n, col), jnp.float32)
        right = jnp.zeros((B, n, F_total - col - d), jnp.float32)
        onecol = jnp.zeros((B, n, G), jnp.float32).at[:, :, g].set(1.0)
        slabs.append(jnp.concatenate([left, x.astype(jnp.float32), right, onecol],
                                     axis=-1))
        col += d
    x_slab = jnp.concatenate(slabs, axis=1)           # (B, S, Fp)

    # Fused QKV weight: per-group feature-row blocks stacked, then G bias rows.
    w_big = jnp.concatenate(list(ws) + list(bs), axis=0)   # (Fp, 3*H*Hd)

    # --- batch blocking: aim for >= target_rows MXU rows per grid step ---------
    bt = max(1, math.ceil(target_rows / S))
    m = 8 // math.gcd(S, 8)                           # keep bt*S a multiple of 8
    bt = math.ceil(bt / m) * m
    if bt >= B:
        bt, bpad = B, B
    else:
        bpad = math.ceil(B / bt) * bt
    if bpad != B:
        x_slab = jnp.concatenate(
            [x_slab, jnp.zeros((bpad - B, S, Fp), jnp.float32)], axis=0)
    x_flat = x_slab.reshape(bpad * S, Fp)

    kern = functools.partial(_fused_kernel, num_heads=H, hidden_dim=Hd,
                             bt=bt, seq_len=S)

    flops = (2 * bpad * S * Fp * qkv_w
             + H * (2 * 2 * bpad * S * S * Hd + 2 * bpad * S * Hd * Hd))
    bytes_accessed = 4 * (bpad * S * Fp + Fp * qkv_w + H * Hd * Hd + Hd
                          + bpad * S * Hd)
    cost = pl.CostEstimate(flops=flops, transcendentals=bpad * S * S * H,
                           bytes_accessed=bytes_accessed)

    out = pl.pallas_call(
        kern,
        out_shape=jax.ShapeDtypeStruct((bpad, S, Hd), jnp.float32),
        grid=(bpad // bt,),
        in_specs=[
            pl.BlockSpec((bt * S, Fp), lambda i: (i, 0)),      # input slab (per block)
            pl.BlockSpec(w_big.shape, lambda i: (0, 0)),       # fused QKV weight
            pl.BlockSpec(packed["lin_w"].shape, lambda i: (0, 0)),
            pl.BlockSpec(packed["lin_b"].shape, lambda i: (0, 0)),
        ],
        out_specs=pl.BlockSpec((bt, S, Hd), lambda i: (i, 0, 0)),
        scratch_shapes=[pltpu.VMEM((bt, S, qkv_w), jnp.float32)],
        compiler_params=pltpu.CompilerParams(
            # batch blocks are fully independent -> shard across TCs on v7x
            dimension_semantics=("parallel",)),
        cost_estimate=cost,
    )(x_flat, w_big, packed["lin_w"], packed["lin_b"])

    return out[:B], lengths


# ----------------------------- pure-JAX reference -------------------------- #

def reference_forward(params, state, hidden_dim, num_heads):
    scale = float(hidden_dim) ** 0.5
    results = []
    for h in range(num_heads):
        Q, K, V = [], [], []
        for i, player in enumerate(("player_0", "player_1")):
            fac = state[player]["factories"]
            units = state[player]["units"]
            for role, lst in enumerate((Q, K, V)):
                idx = h * 6 + i * 3 + role
                lst.append(jnp.einsum("bnf,of->bno", fac, params["fac_w"][idx])
                           + params["fac_b"][idx])
            if units is not None and len(units) > 0:
                for role, lst in enumerate((Q, K, V)):
                    idx = h * 6 + i * 3 + role
                    lst.append(jnp.einsum("bnf,of->bno", units, params["unit_w"][idx])
                               + params["unit_b"][idx])
        Qc = jnp.concatenate(Q, axis=1)
        Kc = jnp.concatenate(K, axis=1)
        Vc = jnp.concatenate(V, axis=1)
        scores = jnp.einsum("bsd,btd->bst", Qc, Kc) / scale
        results.append(jax.nn.softmax(scores, axis=2) @ Vc)
    result = jnp.concatenate(results, axis=2)
    return jnp.einsum("bsf,of->bso", result, params["lin_w"]) + params["lin_b"]


# ----------------------------------- main ----------------------------------- #

if __name__ == "__main__":
    B, Nf, Nu = 2, 5, 7
    Df, Du, Hd, NH = 8, 12, 32, 2

    key = jax.random.PRNGKey(0)
    kp, k0f, k0u, k1f, k1u = jax.random.split(key, 5)
    raw = init_params(kp, Df, Du, Hd, NH)
    packed = pack_params(raw, Hd, NH)

    state = {
        "player_0": {
            "factories": jax.random.normal(k0f, (B, Nf, Df), jnp.float32),
            "units": jax.random.normal(k0u, (B, Nu, Du), jnp.float32),
        },
        "player_1": {
            "factories": jax.random.normal(k1f, (B, Nf, Df), jnp.float32),
            "units": jax.random.normal(k1u, (B, Nu, Du), jnp.float32),
        },
    }

    out, lengths = four_seq_mh_attention(packed, state, Hd, NH)
    out = jax.block_until_ready(out)

    S = 2 * (Nf + Nu)
    assert out.shape == (B, S, Hd), out.shape
    assert lengths == {"player_0": {"factories": Nf, "units": Nu},
                       "player_1": {"factories": Nf, "units": Nu}}

    ref = jax.block_until_ready(reference_forward(raw, state, Hd, NH))
    np.testing.assert_allclose(np.asarray(out), np.asarray(ref), rtol=3e-3, atol=3e-3)

    print("KERNEL_OK")
</pallas_src>

<mosaic_0001>
module attributes {stable_mosaic.version = 11 : i64} {
  func.func @_fused_kernel(%arg0: i32, %arg1: memref<48x44xf32, #tpu.memory_space<vmem>>, %arg2: memref<44x192xf32, #tpu.memory_space<vmem>>, %arg3: memref<64x32xf32, #tpu.memory_space<vmem>>, %arg4: memref<1x32xf32, #tpu.memory_space<vmem>>, %arg5: memref<2x24x32xf32, #tpu.memory_space<vmem>>, %arg6: memref<2x24x192xf32, #tpu.memory_space<vmem>>) attributes {dimension_semantics = [#tpu.dimension_semantics<parallel>], iteration_bounds = array<i64: 1>, scalar_prefetch = 0 : i64, scratch_operands = 1 : i64, tpu.core_type = #tpu.core_type<tc>, window_params = [{transform_indices = @transform_0, window_bounds = array<i64: 48, 44>}, {pipeline_mode = #tpu.pipeline_mode<synchronous>, transform_indices = @transform_1, window_bounds = array<i64: 44, 192>}, {pipeline_mode = #tpu.pipeline_mode<synchronous>, transform_indices = @transform_2, window_bounds = array<i64: 64, 32>}, {pipeline_mode = #tpu.pipeline_mode<synchronous>, transform_indices = @transform_3, window_bounds = array<i64: 1, 32>}, {transform_indices = @transform_4, window_bounds = array<i64: 2, 24, 32>}]} {
    %c0 = arith.constant 0 : index
    %c0_0 = arith.constant 0 : index
    %0 = vector.load %arg1[%c0, %c0_0] : memref<48x44xf32, #tpu.memory_space<vmem>>, vector<48x44xf32>
    %c0_1 = arith.constant 0 : index
    %c0_2 = arith.constant 0 : index
    %1 = vector.load %arg2[%c0_1, %c0_2] : memref<44x192xf32, #tpu.memory_space<vmem>>, vector<44x192xf32>
    %cst = arith.constant dense<0.000000e+00> : vector<48x192xf32>
    %2 = tpu.matmul %0, %1, %cst {dimension_numbers = #tpu.dot_dimension_numbers<[1], [0], [0], [1], [0, 0, 1, 1], [], []>} : vector<48x44xf32>, vector<44x192xf32>, vector<48x192xf32> -> vector<48x192xf32>
    %3 = vector.shape_cast %2 : vector<48x192xf32> to vector<2x24x192xf32>
    %c0_3 = arith.constant 0 : index
    %c0_4 = arith.constant 0 : index
    %c0_5 = arith.constant 0 : index
    %4 = vector.load %arg6[%c0_3, %c0_4, %c0_5] : memref<2x24x192xf32, #tpu.memory_space<vmem>>, vector<2x24x192xf32>
    tpu.vector_store %arg6[%c0_3, %c0_4, %c0_5], %3 {strides = array<i32>} : memref<2x24x192xf32, #tpu.memory_space<vmem>>, vector<2x24x192xf32>,
    %c0_6 = arith.constant 0 : index
    %c0_7 = arith.constant 0 : index
    %c0_8 = arith.constant 0 : index
    %5 = vector.load %arg6[%c0_6, %c0_7, %c0_8] : memref<2x24x192xf32, #tpu.memory_space<vmem>>, vector<2x24x96xf32>
    %6 = vector.extract_strided_slice %5 {offsets = [0, 0, 0], sizes = [2, 24, 32], strides = [1, 1, 1]} : vector<2x24x96xf32> to vector<2x24x32xf32>
    %7 = vector.extract_strided_slice %5 {offsets = [0, 0, 32], sizes = [2, 24, 32], strides = [1, 1, 1]} : vector<2x24x96xf32> to vector<2x24x32xf32>
    %8 = vector.extract_strided_slice %5 {offsets = [0, 0, 64], sizes = [2, 24, 32], strides = [1, 1, 1]} : vector<2x24x96xf32> to vector<2x24x32xf32>
    "tpu.trace_start"() <{level = 10 : i32, message = "bqd,bkd->bqk"}> : () -> ()
    %cst_9 = arith.constant dense<0.000000e+00> : vector<2x24x24xf32>
    %9 = tpu.matmul %6, %7, %cst_9 {dimension_numbers = #tpu.dot_dimension_numbers<[2], [2], [1], [1], [0, 0, 0, 1, 1, 1], [0], [0]>} : vector<2x24x32xf32>, vector<2x24x32xf32>, vector<2x24x24xf32> -> vector<2x24x24xf32>
    "tpu.trace_stop"() : () -> ()
    %cst_10 = arith.constant dense<0xFF800000> : vector<2x24xf32>
    %10 = vector.multi_reduction <maximumf>, %9, %cst_10 [2] : vector<2x24x24xf32> to vector<2x24xf32>
    %11 = vector.shape_cast %10 : vector<2x24xf32> to vector<2x24x1xf32>
    %12 = vector.broadcast %11 : vector<2x24x1xf32> to vector<2x24x24xf32>
    %13 = arith.subf %9, %12 : vector<2x24x24xf32>
    %14 = math.exp %13 : vector<2x24x24xf32>
    %cst_11 = arith.constant dense<0.000000e+00> : vector<2x24xf32>
    %15 = vector.multi_reduction <add>, %14, %cst_11 [2] : vector<2x24x24xf32> to vector<2x24xf32>
    %16 = vector.shape_cast %15 : vector<2x24xf32> to vector<2x24x1xf32>
    %17 = tpu.reciprocal %16 {approx = true} : vector<2x24x1xf32> -> vector<2x24x1xf32>
    %18 = vector.broadcast %17 : vector<2x24x1xf32> to vector<2x24x24xf32>
    %19 = arith.mulf %14, %18 : vector<2x24x24xf32>
    "tpu.trace_start"() <{level = 10 : i32, message = "bqk,bkd->bqd"}> : () -> ()
    %cst_12 = arith.constant dense<0.000000e+00> : vector<2x24x32xf32>
    %20 = tpu.matmul %19, %8, %cst_12 {dimension_numbers = #tpu.dot_dimension_numbers<[2], [1], [1], [2], [0, 0, 0, 1, 1, 2], [0], [0]>} : vector<2x24x24xf32>, vector<2x24x32xf32>, vector<2x24x32xf32> -> vector<2x24x32xf32>
    "tpu.trace_stop"() : () -> ()
    %21 = vector.shape_cast %20 : vector<2x24x32xf32> to vector<48x32xf32>
    %c0_13 = arith.constant 0 : index
    %c0_14 = arith.constant 0 : index
    %22 = vector.load %arg3[%c0_13, %c0_14] : memref<64x32xf32, #tpu.memory_space<vmem>>, vector<32x32xf32>
    %cst_15 = arith.constant dense<0.000000e+00> : vector<48x32xf32>
    %23 = tpu.matmul %21, %22, %cst_15 {dimension_numbers = #tpu.dot_dimension_numbers<[1], [0], [0], [1], [0, 0, 1, 1], [], []>} : vector<48x32xf32>, vector<32x32xf32>, vector<48x32xf32> -> vector<48x32xf32>
    %c0_16 = arith.constant 0 : index
    %c0_17 = arith.constant 0 : index
    %24 = vector.load %arg4[%c0_16, %c0_17] : memref<1x32xf32, #tpu.memory_space<vmem>>, vector<1x32xf32>
    %25 = vector.broadcast %24 : vector<1x32xf32> to vector<48x32xf32>
    %26 = arith.addf %23, %25 : vector<48x32xf32>
    %27 = vector.shape_cast %26 : vector<48x32xf32> to vector<2x24x32xf32>
    %c0_18 = arith.constant 0 : index
    %c0_19 = arith.constant 0 : index
    %c0_20 = arith.constant 0 : index
    %28 = vector.load %arg5[%c0_18, %c0_19, %c0_20] : memref<2x24x32xf32, #tpu.memory_space<vmem>>, vector<2x24x32xf32>
    tpu.vector_store %arg5[%c0_18, %c0_19, %c0_20], %27 {strides = array<i32>} : memref<2x24x32xf32, #tpu.memory_space<vmem>>, vector<2x24x32xf32>,
    %c0_21 = arith.constant 0 : index
    %c0_22 = arith.constant 0 : index
    %c96 = arith.constant 96 : index
    %29 = vector.load %arg6[%c0_21, %c0_22, %c96] : memref<2x24x192xf32, #tpu.memory_space<vmem>>, vector<2x24x96xf32>
    %30 = vector.extract_strided_slice %29 {offsets = [0, 0, 0], sizes = [2, 24, 32], strides = [1, 1, 1]} : vector<2x24x96xf32> to vector<2x24x32xf32>
    %31 = vector.extract_strided_slice %29 {offsets = [0, 0, 32], sizes = [2, 24, 32], strides = [1, 1, 1]} : vector<2x24x96xf32> to vector<2x24x32xf32>
    %32 = vector.extract_strided_slice %29 {offsets = [0, 0, 64], sizes = [2, 24, 32], strides = [1, 1, 1]} : vector<2x24x96xf32> to vector<2x24x32xf32>
    "tpu.trace_start"() <{level = 10 : i32, message = "bqd,bkd->bqk"}> : () -> ()
    %cst_23 = arith.constant dense<0.000000e+00> : vector<2x24x24xf32>
    %33 = tpu.matmul %30, %31, %cst_23 {dimension_numbers = #tpu.dot_dimension_numbers<[2], [2], [1], [1], [0, 0, 0, 1, 1, 1], [0], [0]>} : vector<2x24x32xf32>, vector<2x24x32xf32>, vector<2x24x24xf32> -> vector<2x24x24xf32>
    "tpu.trace_stop"() : () -> ()
    %cst_24 = arith.constant dense<0xFF800000> : vector<2x24xf32>
    %34 = vector.multi_reduction <maximumf>, %33, %cst_24 [2] : vector<2x24x24xf32> to vector<2x24xf32>
    %35 = vector.shape_cast %34 : vector<2x24xf32> to vector<2x24x1xf32>
    %36 = vector.broadcast %35 : vector<2x24x1xf32> to vector<2x24x24xf32>
    %37 = arith.subf %33, %36 : vector<2x24x24xf32>
    %38 = math.exp %37 : vector<2x24x24xf32>
    %cst_25 = arith.constant dense<0.000000e+00> : vector<2x24xf32>
    %39 = vector.multi_reduction <add>, %38, %cst_25 [2] : vector<2x24x24xf32> to vector<2x24xf32>
    %40 = vector.shape_cast %39 : vector<2x24xf32> to vector<2x24x1xf32>
    %41 = tpu.reciprocal %40 {approx = true} : vector<2x24x1xf32> -> vector<2x24x1xf32>
    %42 = vector.broadcast %41 : vector<2x24x1xf32> to vector<2x24x24xf32>
    %43 = arith.mulf %38, %42 : vector<2x24x24xf32>
    "tpu.trace_start"() <{level = 10 : i32, message = "bqk,bkd->bqd"}> : () -> ()
    %cst_26 = arith.constant dense<0.000000e+00> : vector<2x24x32xf32>
    %44 = tpu.matmul %43, %32, %cst_26 {dimension_numbers = #tpu.dot_dimension_numbers<[2], [1], [1], [2], [0, 0, 0, 1, 1, 2], [0], [0]>} : vector<2x24x24xf32>, vector<2x24x32xf32>, vector<2x24x32xf32> -> vector<2x24x32xf32>
    "tpu.trace_stop"() : () -> ()
    %45 = vector.shape_cast %44 : vector<2x24x32xf32> to vector<48x32xf32>
    %c32 = arith.constant 32 : index
    %c0_27 = arith.constant 0 : index
    %46 = vector.load %arg3[%c32, %c0_27] : memref<64x32xf32, #tpu.memory_space<vmem>>, vector<32x32xf32>
    %cst_28 = arith.constant dense<0.000000e+00> : vector<48x32xf32>
    %47 = tpu.matmul %45, %46, %cst_28 {dimension_numbers = #tpu.dot_dimension_numbers<[1], [0], [0], [1], [0, 0, 1, 1], [], []>} : vector<48x32xf32>, vector<32x32xf32>, vector<48x32xf32> -> vector<48x32xf32>
    %c0_29 = arith.constant 0 : index
    %c0_30 = arith.constant 0 : index
    %c0_31 = arith.constant 0 : index
    %48 = vector.load %arg5[%c0_29, %c0_30, %c0_31] : memref<2x24x32xf32, #tpu.memory_space<vmem>>, vector<2x24x32xf32>
    %49 = vector.shape_cast %47 : vector<48x32xf32> to vector<2x24x32xf32>
    %50 = arith.addf %48, %49 : vector<2x24x32xf32>
    %c0_32 = arith.constant 0 : index
    %c0_33 = arith.constant 0 : index
    %c0_34 = arith.constant 0 : index
    %51 = vector.load %arg5[%c0_32, %c0_33, %c0_34] : memref<2x24x32xf32, #tpu.memory_space<vmem>>, vector<2x24x32xf32>
    tpu.vector_store %arg5[%c0_32, %c0_33, %c0_34], %50 {strides = array<i32>} : memref<2x24x32xf32, #tpu.memory_space<vmem>>, vector<2x24x32xf32>,
    return
  }
  func.func @transform_0(%arg0: i32) -> (i32, i32) {
    %c0_i32 = arith.constant 0 : i32
    %c0_i32_0 = arith.constant 0 : i32
    return %arg0, %c0_i32 : i32, i32
  }
  func.func @transform_1(%arg0: i32) -> (i32, i32) {
    %c0_i32 = arith.constant 0 : i32
    %c0_i32_0 = arith.constant 0 : i32
    %c0_i32_1 = arith.constant 0 : i32
    return %c0_i32, %c0_i32_0 : i32, i32
  }
  func.func @transform_2(%arg0: i32) -> (i32, i32) {
    %c0_i32 = arith.constant 0 : i32
    %c0_i32_0 = arith.constant 0 : i32
    %c0_i32_1 = arith.constant 0 : i32
    return %c0_i32, %c0_i32_0 : i32, i32
  }
  func.func @transform_3(%arg0: i32) -> (i32, i32) {
    %c0_i32 = arith.constant 0 : i32
    %c0_i32_0 = arith.constant 0 : i32
    %c0_i32_1 = arith.constant 0 : i32
    return %c0_i32, %c0_i32_0 : i32, i32
  }
  func.func @transform_4(%arg0: i32) -> (i32, i32, i32) {
    %c0_i32 = arith.constant 0 : i32
    %c0_i32_0 = arith.constant 0 : i32
    %c0_i32_1 = arith.constant 0 : i32
    return %arg0, %c0_i32, %c0_i32_0 : i32, i32, i32
  }
}

</mosaic_0001>

<bundles_post_ra>
// kernel: tpu_custom_call.1
= control target key start
LH: loop header
LB: loop body
LE: loop exit
PB: predicated region body
PF: predicated region fallthrough
CT: control target
= control target key end

     0   :  { %9 = vsyncpa [#allocation4], 0  ;;  %s1383_s0 = inlined_call_operand.hbm [shape: f32[48,44], index: 0, kind: input, shape index: {}]   ;;  %s1384_s1 = inlined_call_operand.vmem [shape: f32[44,192], index: 1, kind: input, shape index: {}]   ;;  %s1385_s2 = inlined_call_operand.vmem [shape: f32[64,32], index: 2, kind: input, shape index: {}]   ;;  %s1386_s3 = inlined_call_operand.vmem [shape: f32[1,32], index: 3, kind: input, shape index: {}]   ;;  %s1387_s4 = inlined_call_operand.hbm [shape: f32[2,24,32], index: 4, kind: output, shape index: {}]  }
   0x1   :  { %10 = vsyncpa [#allocation5], 0  ;;  %s15_s17 = sshll.u32 %s1383_s0, 4  ;;  %s1039_s18 = smov [#allocation3]   ;;  %s16_s17 = int_to_ptr.hbm [resolvable:$true] %s15_s17 }
   0x2   :  { %s17_s19 = sshll.u32 %s1039_s18, 4  ;;  %s1040_s20 = smov 128   ;;  %s18_s19 = int_to_ptr.vmem [resolvable:$true] %s17_s19 }
   0x3   :  { %s1041_s21 = smov 8  }
   0x4   :  { %23 = dma.hbm_to_vmem [thread:$0]  %s16_s17, 768, %s18_s19, [#allocation4], %s1040_s20, %s1040_s20, %s1041_s21  }
   0x5   :  { %1035 = dma.done.wait [#allocation4], 768  }
   0x6   :  { %1036 = vsyncadd [#allocation4], 4294966528  ;;  %vm71_vm0 = vcmask 1043456   ;;  %v50_v0 = vld [vmem:[%s1384_s1 + $0x50] sm:$0xf]  ;;  %v48_v1 = vld [vmem:[%s1384_s1 + $0x40] sm:$0xff] }
   0x7   :  { %844 = vmatpush.msk.msra.mxu0 %vm71_vm0, %v50_v0  ;;  %v46_v2 = vld [vmem:[%s1384_s1 + $0x30] sm:$0xff]  ;;  %v44_v3 = vld [vmem:[%s1384_s1 + $0x20] sm:$0xff]  ;;  %vm52_vm1 = vcmask 359424   ;;  %v35_v7 = vld [vmem:[#allocation3 + $0x8] sm:$0xff]  ;;  %s1042_s19 = smov 96   ;;  %vm149_vm2 = vcmask 523264  }
   0x8   :  { %v42_v4 = vld [vmem:[%s1384_s1 + $0x10] sm:$0xff]  ;;  %v40_v5 = vld [vmem:[%s1384_s1] sm:$0xff]  ;;  %v37_v9 = vld [vmem:[#allocation3 + $0x18] sm:$0xff]  ;;  %vm176_vm3 = vcmask 261120   ;;  %vm262_vm4 = vcmask 195584   ;;  %s1044_s22 = smov 64  }
   0x9   :  { %89 = vmatpush.msra.mxu0 %v48_v1  ;;  %v34_v6 = vld [vmem:[#allocation3] sm:$0xff]  ;;  %v36_v8 = vld [vmem:[#allocation3 + $0x10] sm:$0xff]  ;;  %v39_v11 = vld [vmem:[#allocation3 + $0x28] sm:$0xff]  ;;  %s831_s16 = sshll.u32 %s1387_s4, 4  ;;  %s832_s16 = int_to_ptr.hbm [resolvable:$true] %s831_s16 }
   0xa   :  { %v38_v10 = vld [vmem:[#allocation3 + $0x20] sm:$0xff]  ;;  %v51_v12 = vld [vmem:[%s1384_s1 + $0x58] sm:$0xf]  ;;  %v49_v13 = vld [vmem:[%s1384_s1 + $0x48] sm:$0xff] }
   0xb   :  { %90 = vmatpush.msra.mxu0 %v46_v2  ;;  %851 = vmatpush.msk.msra.mxu1 %vm71_vm0, %v51_v12  ;;  %v47_v14 = vld [vmem:[%s1384_s1 + $0x38] sm:$0xff]  ;;  %v45_v15 = vld [vmem:[%s1384_s1 + $0x28] sm:$0xff] }
   0xc   :  { %v43_v16 = vld [vmem:[%s1384_s1 + $0x18] sm:$0xff]  ;;  %v41_v17 = vld [vmem:[%s1384_s1 + $0x8] sm:$0xff]  ;;  %s1043_s1 = smov 32  }
   0xd   :  { %91 = vmatpush.msra.mxu0 %v44_v3  ;;  %124 = vmatpush.msra.mxu1 %v49_v13 }
   0xf   :  { %92 = vmatpush.msra.mxu0 %v42_v4  ;;  %125 = vmatpush.msra.mxu1 %v47_v14 }
  0x11   :  { %93 = vmatpush.msra.mxu0 %v40_v5  ;;  %126 = vmatpush.msra.mxu1 %v45_v15 }
  0x12   :  { %845 = vmatmul.msk.f32.vlgmr.msra.gmra.mxu0 %vm52_vm1, %v34_v6 }
  0x13   :  { %127 = vmatpush.msra.mxu1 %v43_v16 }
  0x15   :  { %128 = vmatpush.msra.mxu1 %v41_v17 }
  0x16   :  { %852 = vmatmul.msk.f32.vlgmr.msra.gmra.mxu1 %vm52_vm1, %v34_v6 }
  0x1a   :  { %846 = vmatmul.msk.f32.gmra.mxu0 %vm52_vm1, %v35_v7 }
  0x1e   :  { %853 = vmatmul.msk.f32.gmra.mxu1 %vm52_vm1, %v35_v7 }
  0x22   :  { %847 = vmatmul.msk.f32.gmra.mxu0 %vm52_vm1, %v36_v8 }
  0x26   :  { %854 = vmatmul.msk.f32.gmra.mxu1 %vm52_vm1, %v36_v8 }
  0x2a   :  { %848 = vmatmul.msk.f32.gmra.mxu0 %vm52_vm1, %v37_v9 }
  0x2e   :  { %855 = vmatmul.msk.f32.gmra.mxu1 %vm52_vm1, %v37_v9 }
  0x32   :  { %849 = vmatmul.msk.f32.gmra.mxu0 %vm52_vm1, %v38_v10 }
  0x36   :  { %856 = vmatmul.msk.f32.gmra.mxu1 %vm52_vm1, %v38_v10 }
  0x3a   :  { %850 = vmatmul.msk.f32.gmra.mxu0 %vm52_vm1, %v39_v11 }
  0x3e   :  { %857 = vmatmul.msk.f32.gmra.mxu1 %vm52_vm1, %v39_v11 }
  0x8f   :  { %v1124_v18 = vpop.f32.mrf.mxu0 }
  0x90   :  { %170 = vrot.lane.b32.xlu1 %v1124_v18, %s1042_s19 }
  0x93   :  { %v130_v24 = vpop.f32.mrf.mxu1 }
  0x94   :  { %150 = vst.msk [vmem:[#allocation2 + $0x8] sm:$0xff] %vm149_vm2, %v130_v24 }
  0x97   :  { %v1129_v19 = vpop.f32.mrf.mxu0 }
  0x9b   :  { %v133_v25 = vpop.f32.mrf.mxu1  ;;  %v1167_v31 = vld [vmem:[#allocation2 + $0x8] sm:$0xff] }
  0x9c   :  { %152 = vst.msk [vmem:[#allocation2 + $0x18] sm:$0xff] %vm149_vm2, %v133_v25 }
  0x9f   :  { %v1132_v20 = vpop.f32.mrf.mxu0 }
  0xa0   :  { %174 = vrot.lane.b32.xlu0 %v1132_v20, %s1042_s19  ;;  %v913_v47 = vpack.i.bf16 %v1129_v19, %v1132_v20 }
  0xa3   :  { %v136_v26 = vpop.f32.mrf.mxu1  ;;  %v1160_v29 = vld [vmem:[#allocation2 + $0x18] sm:$0xff] }
  0xa4   :  { %154 = vst.msk [vmem:[#allocation2 + $0x28] sm:$0xff] %vm149_vm2, %v136_v26 }
  0xa7   :  { %v1137_v21 = vpop.f32.mrf.mxu0 }
  0xa8   :  { %172 = vrot.lane.b32.xlu0 %v1129_v19, %s1042_s19 }
  0xab   :  { %v1156_v27 = vld [vmem:[#allocation2 + $0x28] sm:$0xff]  ;;  %v139_v34 = vpop.f32.mrf.mxu1 }
  0xac   :  { %882 = vmatpush.xpose.msk.msrb.mxu1 %vm176_vm3, %v1156_v27  ;;  %v923_v30 = vpack.i.bf16 %v1160_v29, %v1156_v27  ;;  %156 = vst.msk [vmem:[#allocation2 + $0x38] sm:$0xff] %vm149_vm2, %v139_v34 }
  0xaf   :  { %v1141_v22 = vpop.f32.mrf.mxu0 }
  0xb0   :  { %220 = vrot.lane.b32.xlu2 %v1141_v22, %s1042_s19  ;;  %883 = vmatpush.xpose.msk.msrb.mxu1 %vm176_vm3, %v1160_v29 }
  0xb3   :  { %v142_v39 = vpop.f32.mrf.mxu1  ;;  %v1234_v14 = vld [vmem:[#allocation2 + $0x38] sm:$0xff] }
  0xb4   :  { %884 = vmatpush.xpose.msk.msrb.mxu1 %vm176_vm3, %v1167_v31  ;;  %158 = vst.msk [vmem:[#allocation2 + $0x48] sm:$0xff] %vm149_vm2, %v142_v39 }
  0xb7   :  { %v1145_v23 = vpop.f32.mrf.mxu0 }
  0xb8   :  { %222 = vrot.lane.b32.xlu0 %v1145_v23, %s1042_s19  ;;  %v918_v12 = vpack.i.bf16 %v1141_v22, %v1145_v23 }
  0xbb   :  { %v145_v40 = vpop.f32.mrf.mxu1  ;;  %v1230_v13 = vld [vmem:[#allocation2 + $0x48] sm:$0xff] }
  0xbc   :  { %160 = vst.msk [vmem:[#allocation2 + $0x58] sm:$0xff] %vm149_vm2, %v145_v40  ;;  %v933_v15 = vpack.i.bf16 %v1234_v14, %v1230_v13 }
  0xc0   :  { %218 = vrot.lane.b32.xlu0 %v1137_v21, %s1042_s19 }
  0xc3   :  { %v1221_v7 = vld [vmem:[#allocation2 + $0x58] sm:$0xff] }
  0xc8   :  { %499 = vrot.lane.b32.xlu0 %v1124_v18, %s1043_s1 }
 0x102   :  { %v171_v33 = vpop.permute.xlu1 %170 }
 0x10a   :  { %v221_v36 = vpop.permute.xlu2 %220 }
 0x112   :  { %v175_v28 = vpop.permute.xlu0 %174 }
 0x113   :  { %858 = vmatpush.xpose.msk.msra.mxu3 %vm176_vm3, %v175_v28 }
 0x11a   :  { %v173_v32 = vpop.permute.xlu0 %172 }
 0x11b   :  { %859 = vmatpush.xpose.msk.msra.mxu3 %vm176_vm3, %v173_v32 }
 0x11f   :  { %860 = vmatpush.xpose.msk.msra.mxu3 %vm176_vm3, %v171_v33 }
 0x122   :  { %861 = vmatmul.msk.f32.vlgmr.msra.gmra.mxu3 %vm176_vm3, %v1124_v18 }
 0x12a   :  { %862 = vmatmul.msk.f32.gmra.mxu3 %vm176_vm3, %v1129_v19  ;;  %v223_v35 = vpop.permute.xlu0 %222 }
 0x12b   :  { %864 = vmatpush.xpose.msk.msrb.mxu3 %vm176_vm3, %v223_v35  ;;  %v420_v35 = vld [vmem:[%s1385_s2 + $0x18] sm:$0xff] }
 0x12c   :  { %455 = vmatpush.msrb.mxu0 %v420_v35 }
 0x12f   :  { %865 = vmatpush.xpose.msk.msrb.mxu3 %vm176_vm3, %v221_v36  ;;  %v419_v36 = vld [vmem:[%s1385_s2 + $0x10] sm:$0xff] }
 0x130   :  { %456 = vmatpush.msrb.mxu0 %v419_v36 }
 0x132   :  { %863 = vmatmul.msk.f32.gmra.mxu3 %vm176_vm3, %v1132_v20  ;;  %v219_v37 = vpop.permute.xlu0 %218 }
 0x133   :  { %866 = vmatpush.xpose.msk.msrb.mxu3 %vm176_vm3, %v219_v37  ;;  %v418_v37 = vld [vmem:[%s1385_s2 + $0x8] sm:$0xff] }
 0x134   :  { %457 = vmatpush.msrb.mxu0 %v418_v37 }
 0x13a   :  { %v500_v38 = vpop.permute.xlu0 %499  ;;  %867 = vmatmul.msk.f32.vlgmr.msrb.gmra.mxu3 %vm176_vm3, %v1137_v21 }
 0x13b   :  { %885 = vmatmul.msk.f32.vlgmr.msrb.gmra.mxu1 %vm176_vm3, %v500_v38 }
 0x142   :  { %868 = vmatmul.msk.f32.gmra.mxu3 %vm176_vm3, %v1141_v22 }
 0x14a   :  { %869 = vmatmul.msk.f32.gmra.mxu3 %vm176_vm3, %v1145_v23 }
 0x1a5   :  { %v206_v41 = vpop.f32.mrf.mxu3 }
 0x1a6   :  { %v263_v42 = vsel %vm262_vm4, %v206_v41, -inf }
 0x1a7   :  { %264 = vmax.xlane.f32.xlu1 %v263_v42 }
 0x1ad   :  { %v209_v43 = vpop.f32.mrf.mxu3 }
 0x1ae   :  { %v266_v44 = vsel %vm262_vm4, %v209_v43, -inf }
 0x1af   :  { %267 = vmax.xlane.f32.xlu2 %v266_v44 }
 0x1b5   :  { %v212_v45 = vpop.f32.mrf.mxu3 }
 0x1b6   :  { %v269_v46 = vsel %vm262_vm4, %v212_v45, -inf }
 0x1b7   :  { %270 = vmax.xlane.f32.xlu2 %v269_v46 }
 0x1b8   :  { %v1209_v5 = vpop.f32.mrf.mxu1 }
 0x1b9   :  { %v596_v6 = vsel %vm262_vm4, %v1209_v5, -inf }
 0x1bd   :  { %v1203_v3 = vpop.f32.mrf.mxu3 }
 0x1be   :  { %v272_v4 = vsel %vm262_vm4, %v1203_v3, -inf }
 0x1c0   :  { %329 = vrot.lane.b32.xlu1 %v1124_v18, %s1044_s22 }
 0x1c5   :  { %v256_v8 = vpop.f32.mrf.mxu3 }
 0x1c6   :  { %v275_v10 = vsel %vm262_vm4, %v256_v8, -inf }
 0x1cd   :  { %v259_v9 = vpop.f32.mrf.mxu3 }
 0x1ce   :  { %v278_v11 = vsel %vm262_vm4, %v259_v9, -inf }
 0x1cf   :  { %914 = vrot.lane.b32.xlu2 %v913_v47, %s1044_s22 }
 0x21a   :  { %v265_v48 = vpop.xlane.xlu1 %264 }
 0x21b   :  { %v281_v49 = vsub.f32 %v206_v41, %v265_v48 }
 0x21d   :  { %v287_v50 = vmul.f32 1.442695, %v281_v49 }
 0x21f   :  { %939 = vpow2.f32 %v287_v50 }
 0x222   :  { %v268_v51 = vpop.xlane.xlu2 %267 }
 0x223   :  { %v282_v52 = vsub.f32 %v209_v43, %v268_v51  ;;  %v417_v51 = vld [vmem:[%s1385_s2] sm:$0xff] }
 0x224   :  { %458 = vmatpush.msrb.mxu0 %v417_v51 }
 0x225   :  { %v940_v53 = vpop.eup %939  ;;  %v289_v54 = vmul.f32 1.442695, %v282_v52 }
 0x226   :  { %v299_v55 = vsel %vm262_vm4, %v940_v53, 0.0 }
 0x227   :  { %941 = vpow2.f32 %v289_v54  ;;  %300 = vadd.xlane.f32.xlu0 %v299_v55 }
 0x22a   :  { %v271_v56 = vpop.xlane.xlu2 %270 }
 0x22b   :  { %v283_v57 = vsub.f32 %v212_v45, %v271_v56 }
 0x22d   :  { %v942_v58 = vpop.eup %941  ;;  %v291_v59 = vmul.f32 1.442695, %v283_v57 }
 0x22e   :  { %v302_v60 = vsel %vm262_vm4, %v942_v58, 0.0 }
 0x22f   :  { %943 = vpow2.f32 %v291_v59  ;;  %303 = vadd.xlane.f32.xlu2 %v302_v60 }
 0x232   :  { %v915_v61 = vpop.permute.xlu2 %914  ;;  %v330_v2 = vpop.permute.xlu1 %329 }
 0x233   :  { %v916_v62 = vunpack.i.l.bf16 %v915_v61  ;;  %v917_v0 = vunpack.i.h.bf16 %v915_v61 }
 0x235   :  { %v944_v63 = vpop.eup %943  ;;  %360 = vmatpush.msra.mxu2 %v916_v62 }
 0x236   :  { %v305_v1 = vsel %vm262_vm4, %v944_v63, 0.0 }
 0x237   :  { %306 = vadd.xlane.f32.xlu1 %v305_v1  ;;  %361 = vmatpush.msra.mxu2 %v917_v0 }
 0x239   :  { %362 = vmatpush.msra.mxu2 %v330_v2 }
 0x23b   :  { %503 = vrot.lane.b32.xlu0 %v1132_v20, %s1043_s1  ;;  %888 = vmatpush.xpose.msk.msrb.mxu2 %vm176_vm3, %v1221_v7 }
 0x23f   :  { %273 = vmax.xlane.f32.xlu1 %v272_v4  ;;  %889 = vmatpush.xpose.msk.msrb.mxu2 %vm176_vm3, %v1230_v13 }
 0x243   :  { %549 = vrot.lane.b32.xlu0 %v1137_v21, %s1043_s1  ;;  %890 = vmatpush.xpose.msk.msrb.mxu2 %vm176_vm3, %v1234_v14 }
 0x247   :  { %501 = vrot.lane.b32.xlu2 %v1129_v19, %s1043_s1  ;;  %597 = vmax.xlane.f32.xlu1 %v596_v6 }
 0x24b   :  { %551 = vrot.lane.b32.xlu0 %v1141_v22, %s1043_s1 }
 0x24f   :  { %553 = vrot.lane.b32.xlu2 %v1145_v23, %s1043_s1 }
 0x275   :  { %276 = vmax.xlane.f32.xlu0 %v275_v10 }
 0x278   :  { %279 = vmax.xlane.f32.xlu2 %v278_v11 }
 0x289   :  { %919 = vrot.lane.b32.xlu0 %v918_v12, %s1044_s22  ;;  %v928_v12 = vpack.i.bf16 %v1221_v7, %v1167_v31 }
 0x29a   :  { %v301_v16 = vpop.xlane.xlu0 %300 }
 0x29b   :  { %945 = vrcp.f32 %v301_v16 }
 0x2a1   :  { %v946_v17 = vpop.eup %945 }
 0x2a2   :  { %v304_v18 = vpop.xlane.xlu2 %303  ;;  %v323_v19 = vmul.f32 %v946_v17, %v940_v53 }
 0x2a3   :  { %947 = vrcp.f32 %v304_v18  ;;  %v1298_v18 = vld [vmem:[%s1386_s3] ss:$0 sm:$0xff] }
 0x2a4   :  { %870 = vmatmul.msk.f32.vlgmr.msra.gmra.mxu2 %vm262_vm4, %v323_v19 }
 0x2a9   :  { %v948_v20 = vpop.eup %947 }
 0x2aa   :  { %v307_v22 = vpop.xlane.xlu1 %306  ;;  %v502_v23 = vpop.permute.xlu2 %501  ;;  %v324_v24 = vmul.f32 %v948_v20, %v942_v58 }
 0x2ab   :  { %949 = vrcp.f32 %v307_v22  ;;  %886 = vmatmul.msk.f32.gmra.mxu1 %vm176_vm3, %v502_v23 }
 0x2ac   :  { %871 = vmatmul.msk.f32.gmra.mxu2 %vm262_vm4, %v324_v24 }
 0x2ad   :  { %v504_v25 = vpop.permute.xlu0 %503 }
 0x2b1   :  { %v950_v26 = vpop.eup %949 }
 0x2b2   :  { %v325_v28 = vmul.f32 %v950_v26, %v944_v63  ;;  %v554_v34 = vpop.permute.xlu2 %553  ;;  %v274_v58 = vpop.xlane.xlu1 %273 }
 0x2b3   :  { %887 = vmatmul.msk.f32.gmra.mxu1 %vm176_vm3, %v504_v25 }
 0x2b4   :  { %872 = vmatmul.msk.f32.gmra.mxu2 %vm262_vm4, %v325_v28 }
 0x2b5   :  { %v550_v32 = vpop.permute.xlu0 %549 }
 0x2ba   :  { %v598_v60 = vpop.xlane.xlu1 %597 }
 0x2bb   :  { %v614_v61 = vsub.f32 %v1209_v5, %v598_v60  ;;  %v284_v5 = vsub.f32 %v1203_v3, %v274_v58 }
 0x2bc   :  { %891 = vmatmul.msk.f32.vlgmr.msrb.gmra.mxu2 %vm176_vm3, %v550_v32 }
 0x2bd   :  { %v552_v33 = vpop.permute.xlu0 %551  ;;  %v620_v63 = vmul.f32 1.442695, %v614_v61 }
 0x2c4   :  { %892 = vmatmul.msk.f32.gmra.mxu2 %vm176_vm3, %v552_v33 }
 0x2cc   :  { %893 = vmatmul.msk.f32.gmra.mxu2 %vm176_vm3, %v554_v34 }
 0x2e8   :  { %v277_v38 = vpop.xlane.xlu0 %276 }
 0x2e9   :  { %v285_v39 = vsub.f32 %v256_v8, %v277_v38 }
 0x2eb   :  { %v295_v40 = vmul.f32 1.442695, %v285_v39  ;;  %v280_v41 = vpop.xlane.xlu2 %279 }
 0x2ec   :  { %v286_v42 = vsub.f32 %v259_v9, %v280_v41  ;;  %v293_v9 = vmul.f32 1.442695, %v284_v5 }
 0x2ed   :  { %951 = vpow2.f32 %v295_v40 }
 0x2ee   :  { %v297_v43 = vmul.f32 1.442695, %v286_v42 }
 0x2f0   :  { %953 = vpow2.f32 %v297_v43 }
 0x2f1   :  { %955 = vpow2.f32 %v620_v63 }
 0x2f2   :  { %957 = vpow2.f32 %v293_v9 }
 0x2f3   :  { %v1257_v44 = vpop.eup %951 }
 0x2f4   :  { %v311_v45 = vsel %vm262_vm4, %v1257_v44, 0.0 }
 0x2f5   :  { %312 = vadd.xlane.f32.xlu2 %v311_v45 }
 0x2f6   :  { %v1261_v46 = vpop.eup %953 }
 0x2f7   :  { %v314_v49 = vsel %vm262_vm4, %v1261_v46, 0.0  ;;  %v1279_v2 = vpop.eup %955 }
 0x2f8   :  { %v632_v8 = vsel %vm262_vm4, %v1279_v2, 0.0  ;;  %v958_v10 = vpop.eup %957 }
 0x2f9   :  { %v308_v11 = vsel %vm262_vm4, %v958_v10, 0.0 }
 0x2fb   :  { %v920_v47 = vpop.permute.xlu0 %919 }
 0x2fc   :  { %v921_v48 = vunpack.i.l.bf16 %v920_v47  ;;  %v922_v50 = vunpack.i.h.bf16 %v920_v47 }
 0x2fd   :  { %315 = vadd.xlane.f32.xlu2 %v314_v49 }
 0x2fe   :  { %404 = vmatpush.msra.mxu3 %v921_v48 }
 0x300   :  { %405 = vmatpush.msra.mxu3 %v922_v50 }
 0x327   :  { %v364_v52 = vpop.f32.mrf.mxu2 }
 0x328   :  { %876 = vmatmul.msk.f32.vlgmr.msrb.gmra.mxu0 %vm176_vm3, %v364_v52  ;;  %v540_v53 = vpop.f32.mrf.mxu1 }
 0x329   :  { %v599_v54 = vsel %vm262_vm4, %v540_v53, -inf }
 0x32a   :  { %600 = vmax.xlane.f32.xlu1 %v599_v54 }
 0x32f   :  { %v367_v55 = vpop.f32.mrf.mxu2 }
 0x330   :  { %877 = vmatmul.msk.f32.gmra.mxu0 %vm176_vm3, %v367_v55  ;;  %v543_v56 = vpop.f32.mrf.mxu1 }
 0x331   :  { %v602_v57 = vsel %vm262_vm4, %v543_v56, -inf }
 0x332   :  { %603 = vmax.xlane.f32.xlu1 %v602_v57 }
 0x337   :  { %v370_v59 = vpop.f32.mrf.mxu2 }
 0x338   :  { %878 = vmatmul.msk.f32.gmra.mxu0 %vm176_vm3, %v370_v59 }
 0x33f   :  { %v1274_v62 = vpop.f32.mrf.mxu2 }
 0x347   :  { %v590_v0 = vpop.f32.mrf.mxu2 }
 0x348   :  { %v608_v1 = vsel %vm262_vm4, %v590_v0, -inf }
 0x349   :  { %609 = vmax.xlane.f32.xlu2 %v608_v1 }
 0x34b   :  { %373 = vrot.lane.b32.xlu1 %v1137_v21, %s1044_s22  ;;  %v605_v21 = vsel %vm262_vm4, %v1274_v62, -inf }
 0x34f   :  { %v593_v4 = vpop.f32.mrf.mxu2 }
 0x350   :  { %v611_v6 = vsel %vm262_vm4, %v593_v4, -inf }
 0x351   :  { %612 = vmax.xlane.f32.xlu0 %v611_v6  ;;  %633 = vadd.xlane.f32.xlu2 %v632_v8 }
 0x368   :  { %v313_v7 = vpop.xlane.xlu2 %312 }
 0x370   :  { %v316_v28 = vpop.xlane.xlu2 %315 }
 0x375   :  { %309 = vadd.xlane.f32.xlu1 %v308_v11  ;;  %v752_v11 = vld [vmem:[%s1385_s2 + $0x30] sm:$0xff] }
 0x37d   :  { %606 = vmax.xlane.f32.xlu1 %v605_v21  ;;  %v751_v21 = vld [vmem:[%s1385_s2 + $0x28] sm:$0xff] }
 0x396   :  { %924 = vrot.lane.b32.xlu1 %v923_v30, %s1042_s19 }
 0x39d   :  { %v601_v16 = vpop.xlane.xlu1 %600 }
 0x39e   :  { %v615_v3 = vsub.f32 %v540_v53, %v601_v16  ;;  %929 = vrot.lane.b32.xlu1 %v928_v12, %s1042_s19 }
 0x3a0   :  { %v622_v17 = vmul.f32 1.442695, %v615_v3 }
 0x3a2   :  { %959 = vpow2.f32 %v622_v17  ;;  %v750_v17 = vld [vmem:[%s1385_s2 + $0x20] sm:$0xff] }
 0x3a5   :  { %v460_v19 = vpop.f32.mrf.mxu0  ;;  %v604_v20 = vpop.xlane.xlu1 %603 }
 0x3a6   :  { %v461_v22 = vadd.f32 %v1298_v18, %v460_v19  ;;  %v616_v27 = vsub.f32 %v543_v56, %v604_v20 }
 0x3a8   :  { %v1301_v29 = vpop.eup %959  ;;  %478 = vst.msk [vmem:[#allocation6] sm:$0xff] %vm176_vm3, %v461_v22  ;;  %v624_v30 = vmul.f32 1.442695, %v616_v27 }
 0x3a9   :  { %v635_v31 = vsel %vm262_vm4, %v1301_v29, 0.0 }
 0x3aa   :  { %961 = vpow2.f32 %v624_v30  ;;  %636 = vadd.xlane.f32.xlu2 %v635_v31 }
 0x3ad   :  { %v463_v23 = vpop.f32.mrf.mxu0 }
 0x3ae   :  { %v464_v24 = vadd.f32 %v1298_v18, %v463_v23 }
 0x3b0   :  { %v1307_v25 = vpop.eup %961  ;;  %479 = vst.msk [vmem:[#allocation6 + $0x8] sm:$0xff] %vm176_vm3, %v464_v24 }
 0x3b1   :  { %v638_v26 = vsel %vm262_vm4, %v1307_v25, 0.0 }
 0x3b2   :  { %639 = vadd.xlane.f32.xlu2 %v638_v26 }
 0x3b5   :  { %v466_v32 = vpop.f32.mrf.mxu0 }
 0x3b6   :  { %v467_v33 = vadd.f32 %v1298_v18, %v466_v32 }
 0x3b8   :  { %480 = vst.msk [vmem:[#allocation6 + $0x10] sm:$0xff] %vm176_vm3, %v467_v33 }
 0x3bc   :  { %v610_v34 = vpop.xlane.xlu2 %609 }
 0x3bd   :  { %v618_v35 = vsub.f32 %v590_v0, %v610_v34  ;;  %v374_v36 = vpop.permute.xlu1 %373 }
 0x3be   :  { %406 = vmatpush.msra.mxu3 %v374_v36 }
 0x3bf   :  { %v628_v37 = vmul.f32 1.442695, %v618_v35 }
 0x3c1   :  { %963 = vpow2.f32 %v628_v37 }
 0x3c4   :  { %v613_v38 = vpop.xlane.xlu0 %612  ;;  %v634_v56 = vpop.xlane.xlu2 %633 }
 0x3c5   :  { %v619_v39 = vsub.f32 %v593_v4, %v613_v38 }
 0x3c7   :  { %v1314_v40 = vpop.eup %963  ;;  %v630_v41 = vmul.f32 1.442695, %v619_v39 }
 0x3c8   :  { %v644_v42 = vsel %vm262_vm4, %v1314_v40, 0.0 }
 0x3c9   :  { %965 = vpow2.f32 %v630_v41  ;;  %645 = vadd.xlane.f32.xlu0 %v644_v42  ;;  %v807_v41 = vld [vmem:[#allocation6] sm:$0xff] }
 0x3ca   :  { %934 = vrot.lane.b32.xlu2 %v933_v15, %s1042_s19 }
 0x3cf   :  { %v1322_v43 = vpop.eup %965 }
 0x3d0   :  { %v647_v45 = vsel %vm262_vm4, %v1322_v43, 0.0 }
 0x3d1   :  { %648 = vadd.xlane.f32.xlu0 %v647_v45  ;;  %v808_v45 = vld [vmem:[#allocation6 + $0x8] sm:$0xff] }
 0x3e8   :  { %v310_v47 = vpop.xlane.xlu1 %309 }
 0x3e9   :  { %967 = vrcp.f32 %v310_v47 }
 0x3ea   :  { %969 = vrcp.f32 %v313_v7 }
 0x3ef   :  { %v968_v48 = vpop.eup %967 }
 0x3f0   :  { %v326_v49 = vmul.f32 %v968_v48, %v958_v10  ;;  %v607_v50 = vpop.xlane.xlu1 %606  ;;  %v970_v53 = vpop.eup %969  ;;  %v753_v10 = vld [vmem:[%s1385_s2 + $0x38] sm:$0xff]  ;;  %s1045_s2 = smov [#allocation6]  }
 0x3f1   :  { %v617_v51 = vsub.f32 %v1274_v62, %v607_v50  ;;  %v327_v13 = vmul.f32 %v970_v53, %v1257_v44  ;;  %784 = vmatpush.msra.mxu2 %v753_v10  ;;  %s829_s13 = sshll.u32 %s1045_s2, 4  ;;  %s830_s13 = int_to_ptr.vmem [resolvable:$true] %s829_s13 }
 0x3f2   :  { %873 = vmatmul.msk.f32.vlgmr.msra.gmra.mxu3 %vm262_vm4, %v326_v49  ;;  %v809_v49 = vld [vmem:[#allocation6 + $0x10] sm:$0xff] }
 0x3f3   :  { %v626_v52 = vmul.f32 1.442695, %v617_v51  ;;  %785 = vmatpush.msra.mxu2 %v752_v11 }
 0x3f5   :  { %971 = vpow2.f32 %v626_v52  ;;  %786 = vmatpush.msra.mxu2 %v751_v21 }
 0x3f6   :  { %973 = vrcp.f32 %v316_v28 }
 0x3f7   :  { %975 = vrcp.f32 %v634_v56  ;;  %787 = vmatpush.msra.mxu2 %v750_v17 }
 0x3fa   :  { %874 = vmatmul.msk.f32.gmra.mxu3 %vm262_vm4, %v327_v13 }
 0x3fb   :  { %v972_v14 = vpop.eup %971 }
 0x3fc   :  { %v641_v15 = vsel %vm262_vm4, %v972_v14, 0.0  ;;  %v974_v54 = vpop.eup %973 }
 0x3fd   :  { %642 = vadd.xlane.f32.xlu1 %v641_v15  ;;  %v328_v55 = vmul.f32 %v974_v54, %v1261_v46  ;;  %v976_v60 = vpop.eup %975 }
 0x3fe   :  { %v656_v63 = vmul.f32 %v976_v60, %v1279_v2 }
 0x402   :  { %875 = vmatmul.msk.f32.gmra.mxu3 %vm262_vm4, %v328_v55 }
 0x408   :  { %v925_v57 = vpop.permute.xlu1 %924 }
 0x409   :  { %v926_v58 = vunpack.i.l.bf16 %v925_v57  ;;  %v927_v59 = vunpack.i.h.bf16 %v925_v57 }
 0x40b   :  { %693 = vmatpush.msrb.mxu3 %v926_v58 }
 0x40d   :  { %694 = vmatpush.msrb.mxu3 %v927_v59 }
 0x410   :  { %v930_v44 = vpop.permute.xlu1 %929 }
 0x411   :  { %v932_v61 = vunpack.i.h.bf16 %v930_v44  ;;  %v931_v62 = vunpack.i.l.bf16 %v930_v44 }
 0x413   :  { %695 = vmatpush.msrb.mxu3 %v931_v62  ;;  %737 = vmatpush.msra.mxu1 %v932_v61 }
 0x414   :  { %894 = vmatmul.msk.f32.vlgmr.msrb.gmra.mxu3 %vm262_vm4, %v656_v63 }
 0x41d   :  { %v637_v46 = vpop.xlane.xlu2 %636 }
 0x41e   :  { %977 = vrcp.f32 %v637_v46 }
 0x424   :  { %v978_v0 = vpop.eup %977 }
 0x425   :  { %v640_v1 = vpop.xlane.xlu2 %639  ;;  %v657_v4 = vmul.f32 %v978_v0, %v1301_v29 }
 0x426   :  { %979 = vrcp.f32 %v640_v1 }
 0x427   :  { %895 = vmatmul.msk.f32.gmra.mxu3 %vm262_vm4, %v657_v4 }
 0x42c   :  { %v980_v6 = vpop.eup %979 }
 0x42d   :  { %v935_v8 = vpop.permute.xlu2 %934  ;;  %v658_v5 = vmul.f32 %v980_v6, %v1307_v25 }
 0x42e   :  { %v936_v9 = vunpack.i.l.bf16 %v935_v8  ;;  %v937_v2 = vunpack.i.h.bf16 %v935_v8 }
 0x42f   :  { %896 = vmatmul.msk.f32.gmra.mxu3 %vm262_vm4, %v658_v5 }
 0x430   :  { %738 = vmatpush.msra.mxu1 %v936_v9 }
 0x432   :  { %739 = vmatpush.msra.mxu1 %v937_v2 }
 0x43c   :  { %v646_v16 = vpop.xlane.xlu0 %645 }
 0x444   :  { %v649_v22 = vpop.xlane.xlu0 %648 }
 0x470   :  { %v643_v12 = vpop.xlane.xlu1 %642 }
 0x471   :  { %981 = vrcp.f32 %v643_v12 }
 0x472   :  { %983 = vrcp.f32 %v646_v16 }
 0x473   :  { %985 = vrcp.f32 %v649_v22 }
 0x475   :  { %v408_v3 = vpop.f32.mrf.mxu3 }
 0x476   :  { %879 = vmatmul.msk.f32.gmra.mxu0 %vm176_vm3, %v408_v3 }
 0x477   :  { %v982_v19 = vpop.eup %981 }
 0x478   :  { %v659_v20 = vmul.f32 %v982_v19, %v972_v14  ;;  %v984_v27 = vpop.eup %983 }
 0x479   :  { %v660_v30 = vmul.f32 %v984_v27, %v1314_v40  ;;  %v986_v31 = vpop.eup %985 }
 0x47a   :  { %897 = vmatmul.msk.f32.vlgmr.msra.gmra.mxu1 %vm262_vm4, %v659_v20  ;;  %v661_v23 = vmul.f32 %v986_v31, %v1322_v43 }
 0x47d   :  { %v411_v29 = vpop.f32.mrf.mxu3 }
 0x47e   :  { %880 = vmatmul.msk.f32.gmra.mxu0 %vm176_vm3, %v411_v29 }
 0x482   :  { %898 = vmatmul.msk.f32.gmra.mxu1 %vm262_vm4, %v660_v30 }
 0x485   :  { %v414_v7 = vpop.f32.mrf.mxu3 }
 0x486   :  { %881 = vmatmul.msk.f32.gmra.mxu0 %vm176_vm3, %v414_v7 }
 0x48a   :  { %899 = vmatmul.msk.f32.gmra.mxu1 %vm262_vm4, %v661_v23 }
 0x497   :  { %v697_v24 = vpop.f32.mrf.mxu3 }
 0x498   :  { %900 = vmatmul.msk.f32.vlgmr.msra.gmra.mxu2 %vm176_vm3, %v697_v24 }
 0x4aa   :  { %v700_v25 = vpop.f32.mrf.mxu3 }
 0x4ab   :  { %901 = vmatmul.msk.f32.gmra.mxu2 %vm176_vm3, %v700_v25 }
 0x4b2   :  { %v703_v26 = vpop.f32.mrf.mxu3 }
 0x4b3   :  { %902 = vmatmul.msk.f32.gmra.mxu2 %vm176_vm3, %v703_v26 }
 0x4f3   :  { %v469_v28 = vpop.f32.mrf.mxu0 }
 0x4f4   :  { %v470_v32 = vadd.f32 %v1298_v18, %v469_v28 }
 0x4f6   :  { %481 = vst.msk [vmem:[#allocation6 + $0x18] sm:$0xff] %vm176_vm3, %v470_v32 }
 0x4f7   :  { %v741_v33 = vpop.f32.mrf.mxu1 }
 0x4f8   :  { %903 = vmatmul.msk.f32.gmra.mxu2 %vm176_vm3, %v741_v33 }
 0x4fb   :  { %v472_v34 = vpop.f32.mrf.mxu0 }
 0x4fc   :  { %v473_v35 = vadd.f32 %v1298_v18, %v472_v34 }
 0x4fd   :  { %v810_v51 = vld [vmem:[#allocation6 + $0x18] sm:$0xff] }
 0x4fe   :  { %482 = vst.msk [vmem:[#allocation6 + $0x20] sm:$0xff] %vm176_vm3, %v473_v35 }
 0x4ff   :  { %v744_v36 = vpop.f32.mrf.mxu1 }
 0x500   :  { %904 = vmatmul.msk.f32.gmra.mxu2 %vm176_vm3, %v744_v36 }
 0x503   :  { %v475_v37 = vpop.f32.mrf.mxu0 }
 0x504   :  { %v476_v38 = vadd.f32 %v1298_v18, %v475_v37 }
 0x505   :  { %v811_v13 = vld [vmem:[#allocation6 + $0x20] sm:$0xff] }
 0x506   :  { %483 = vst.msk [vmem:[#allocation6 + $0x28] sm:$0xff] %vm176_vm3, %v476_v38 }
 0x507   :  { %v747_v39 = vpop.f32.mrf.mxu1 }
 0x508   :  { %905 = vmatmul.msk.f32.gmra.mxu2 %vm176_vm3, %v747_v39 }
 0x50d   :  { %v812_v54 = vld [vmem:[#allocation6 + $0x28] sm:$0xff] }
 0x51b   :  { %v789_v40 = vpop.f32.mrf.mxu2 }
 0x51c   :  { %v813_v42 = vadd.f32 %v807_v41, %v789_v40 }
 0x51e   :  { %819 = vst.msk [vmem:[#allocation6] sm:$0xff] %vm176_vm3, %v813_v42 }
 0x52e   :  { %v792_v43 = vpop.f32.mrf.mxu2 }
 0x52f   :  { %v814_v47 = vadd.f32 %v808_v45, %v792_v43 }
 0x531   :  { %820 = vst.msk [vmem:[#allocation6 + $0x8] sm:$0xff] %vm176_vm3, %v814_v47 }
 0x536   :  { %v795_v48 = vpop.f32.mrf.mxu2 }
 0x537   :  { %v815_v50 = vadd.f32 %v809_v49, %v795_v48 }
 0x539   :  { %821 = vst.msk [vmem:[#allocation6 + $0x10] sm:$0xff] %vm176_vm3, %v815_v50 }
 0x57b   :  { %v798_v18 = vpop.f32.mrf.mxu2 }
 0x57c   :  { %v816_v52 = vadd.f32 %v810_v51, %v798_v18 }
 0x57e   :  { %822 = vst.msk [vmem:[#allocation6 + $0x18] sm:$0xff] %vm176_vm3, %v816_v52 }
 0x583   :  { %v801_v53 = vpop.f32.mrf.mxu2 }
 0x584   :  { %v817_v14 = vadd.f32 %v811_v13, %v801_v53 }
 0x586   :  { %823 = vst.msk [vmem:[#allocation6 + $0x20] sm:$0xff] %vm176_vm3, %v817_v14 }
 0x58b   :  { %v804_v15 = vpop.f32.mrf.mxu2 }
 0x58c   :  { %v818_v55 = vadd.f32 %v812_v54, %v804_v15 }
 0x58e   :  { %824 = vst.msk [vmem:[#allocation6 + $0x28] sm:$0xff] %vm176_vm3, %v818_v55 }
 0x58f   :  { %837 = dma.vmem_to_hbm [thread:$0]  %s830_s13, 768, %s832_s16, [#allocation5], %s1040_s20, %s1040_s20, %s1041_s21  }
 0x590   :  { %1037 = dma.done.wait [#allocation5], 768  }
 0x591   :  { %1038 = vsyncadd [#allocation5], 4294966528 }
 0x592   :  { %842 = vsyncpa [#allocation4], 1 }
 0x593   :  { %843 = vsyncpa [#allocation5], 1 }

</bundles_post_ra>
